<compile_context>
chip_gen: v7x
topology: tpu7x:2x2x1
jax: 0.10.0
libtpu: 0.0.40
codegen_flags: <defaults>
</compile_context>

<pallas_src>
import functools

import jax
import jax.numpy as jnp
from jax.experimental import pallas as pl
from jax.experimental.pallas import tpu as pltpu

_LANE = 128
_TILE_ROWS = 512                      # (512,128) f32 tile = 256 KiB / buffer
_SMALL_ELEMS = _TILE_ROWS * _LANE     # <= one tile's worth -> gridless path
_VMEM = pl.BlockSpec(memory_space=pltpu.MemorySpace.VMEM)


# --------------------------------------------------------------------------
# Kernels
# --------------------------------------------------------------------------
def _fused_eltwise_kernel(x0_ref, x1_ref, y0_ref, y1_ref, z0_ref, z1_ref,
                          a_ref, b_ref, c_ref):
    # All three scaled elementwise adds in one body (VPU only).  Scales are
    # Python float literals -> lowered as vector immediates.
    a_ref[...] = x0_ref[...] + x1_ref[...] * -1.5
    b_ref[...] = y0_ref[...] * 0.6 + y1_ref[...] * 0.4
    c_ref[...] = z0_ref[...] * 3.0 + z1_ref[...]


def _scaled_add_kernel(a_ref, b_ref, o_ref, *, s0, s1):
    # o = s0 * a + s1 * b  (s0/s1 are Python float literals baked per-kernel).
    o_ref[...] = a_ref[...] * s0 + b_ref[...] * s1


# --------------------------------------------------------------------------
# Layout helpers (reshape-only; never pad/slice on the small path)
# --------------------------------------------------------------------------
def _lane_view(x):
    """(rows, 128) lane-dense view if the flat size divides 128 (pure reshape,
    zero-cost bitcast); otherwise the array untouched (one masked vst)."""
    n = x.size
    if n % _LANE == 0:
        return x.reshape(n // _LANE, _LANE)
    return x


# --------------------------------------------------------------------------
# Small path: single fused launch for all three pairs
# --------------------------------------------------------------------------
def _fused_small(x0, x1, y0, y1, z0, z1):
    x0v, x1v = _lane_view(x0), _lane_view(x1)
    y0v, y1v = _lane_view(y0), _lane_view(y1)
    z0v, z1v = _lane_view(z0), _lane_view(z1)

    n_total = x0.size + y0.size + z0.size
    bytes_accessed = 3 * (x0.size * jnp.dtype(x0.dtype).itemsize
                          + y0.size * jnp.dtype(y0.dtype).itemsize
                          + z0.size * jnp.dtype(z0.dtype).itemsize)

    a_v, b_v, c_v = pl.pallas_call(
        _fused_eltwise_kernel,
        out_shape=(
            jax.ShapeDtypeStruct(x0v.shape, x0.dtype),
            jax.ShapeDtypeStruct(y0v.shape, y0.dtype),
            jax.ShapeDtypeStruct(z0v.shape, z0.dtype),
        ),
        in_specs=[_VMEM] * 6,
        out_specs=(_VMEM, _VMEM, _VMEM),
        cost_estimate=pl.CostEstimate(
            flops=3 * n_total, transcendentals=0,
            bytes_accessed=bytes_accessed),
    )(x0v, x1v, y0v, y1v, z0v, z1v)

    return (a_v.reshape(x0.shape), b_v.reshape(y0.shape), c_v.reshape(z0.shape))


# --------------------------------------------------------------------------
# Per-pair path (gridless when small, row-tiled "parallel" grid when large)
# --------------------------------------------------------------------------
def _scaled_add_pair(a0, a1, s0, s1):
    assert a0.shape == a1.shape and a0.dtype == a1.dtype
    n = a0.size
    itemsize = jnp.dtype(a0.dtype).itemsize
    kernel = functools.partial(_scaled_add_kernel, s0=s0, s1=s1)
    cost = pl.CostEstimate(flops=3 * n, transcendentals=0,
                           bytes_accessed=3 * n * itemsize)

    if n <= _SMALL_ELEMS:
        a0v, a1v = _lane_view(a0), _lane_view(a1)
        out = pl.pallas_call(
            kernel,
            out_shape=jax.ShapeDtypeStruct(a0v.shape, a0.dtype),
            in_specs=[_VMEM, _VMEM],
            out_specs=_VMEM,
            cost_estimate=cost,
        )(a0v, a1v)
        return out.reshape(a0.shape)

    # Large path: lane-dense rows + 1-D row grid.  Double-buffered DMA overlap;
    # "parallel" axis is sharded across both TensorCores on v7x.
    pad = (-n) % _LANE
    a0f, a1f = a0.reshape(-1), a1.reshape(-1)
    if pad:
        # TODO(synk): pad only the final tile instead of the whole flat array.
        a0f = jnp.pad(a0f, (0, pad))
        a1f = jnp.pad(a1f, (0, pad))
    rows = (n + pad) // _LANE
    a0v = a0f.reshape(rows, _LANE)
    a1v = a1f.reshape(rows, _LANE)
    tile = min(_TILE_ROWS, rows)

    out = pl.pallas_call(
        kernel,
        out_shape=jax.ShapeDtypeStruct((rows, _LANE), a0.dtype),
        grid=(pl.cdiv(rows, tile),),
        in_specs=[pl.BlockSpec((tile, _LANE), lambda i: (i, 0))] * 2,
        out_specs=pl.BlockSpec((tile, _LANE), lambda i: (i, 0)),
        compiler_params=pltpu.CompilerParams(
            dimension_semantics=("parallel",)),
        cost_estimate=cost,
    )(a0v, a1v)

    flat = out.reshape(-1)
    if pad:
        flat = flat[:n]
    return flat.reshape(a0.shape)


# --------------------------------------------------------------------------
# Model forward
# --------------------------------------------------------------------------
def model_forward(x0, x1, y0, y1, z0, z1):
    assert x0.shape == x1.shape and x0.dtype == x1.dtype
    assert y0.shape == y1.shape and y0.dtype == y1.dtype
    assert z0.shape == z1.shape and z0.dtype == z1.dtype

    if max(x0.size, y0.size, z0.size) <= _SMALL_ELEMS:
        # Everything small: one fused launch for all three pairs.
        return _fused_small(x0, x1, y0, y1, z0, z1)

    # At least one pair is large: give each pair its own (possibly tiled) call.
    a = _scaled_add_pair(x0, x1, 1.0, -1.5)
    b = _scaled_add_pair(y0, y1, 0.6, 0.4)
    c = _scaled_add_pair(z0, z1, 3.0, 1.0)
    return a, b, c


if __name__ == "__main__":
    key = jax.random.PRNGKey(0)
    kx0, kx1, ky0, ky1, kz0, kz1 = jax.random.split(key, 6)

    x_shape = (2, 4, 16, 16)   # 2048 elems -> pure reshape to (16, 128)
    y_shape = (2, 3, 16)       #   96 elems -> natural layout (1 masked vreg)
    z_shape = (2, 8, 8)        #  128 elems -> pure reshape to (1, 128)

    x0 = jax.random.normal(kx0, x_shape, dtype=jnp.float32)
    x1 = jax.random.normal(kx1, x_shape, dtype=jnp.float32)
    y0 = jax.random.normal(ky0, y_shape, dtype=jnp.float32)
    y1 = jax.random.normal(ky1, y_shape, dtype=jnp.float32)
    z0 = jax.random.normal(kz0, z_shape, dtype=jnp.float32)
    z1 = jax.random.normal(kz1, z_shape, dtype=jnp.float32)

    a, b, c = jax.block_until_ready(
        jax.jit(model_forward)(x0, x1, y0, y1, z0, z1))

    # Pure-JAX reference check (small fused path).
    a_ref = x0 + x1 * -1.5
    b_ref = y0 * 0.6 + y1 * 0.4
    c_ref = z0 * 3.0 + z1
    assert a.shape == x_shape and b.shape == y_shape and c.shape == z_shape
    assert jnp.allclose(a, a_ref, atol=1e-6), "mismatch in a"
    assert jnp.allclose(b, b_ref, atol=1e-6), "mismatch in b"
    assert jnp.allclose(c, c_ref, atol=1e-6), "mismatch in c"

    # Also exercise the scalable row-tiled ("parallel" grid) path.
    big_shape = (64, 256, 128)   # 2 Mi elems -> 16384 rows, 32 tiles of 512
    bx0 = jax.random.normal(kx0, big_shape, dtype=jnp.float32)
    bx1 = jax.random.normal(kx1, big_shape, dtype=jnp.float32)
    ba = jax.block_until_ready(
        jax.jit(lambda u, v: _scaled_add_pair(u, v, 1.0, -1.5))(bx0, bx1))
    assert jnp.allclose(ba, bx0 + bx1 * -1.5, atol=1e-6), "mismatch in tiled a"

    print("KERNEL_OK")
</pallas_src>

<mosaic_0001>
module attributes {stable_mosaic.version = 11 : i64} {
  func.func @_fused_eltwise_kernel(%arg0: memref<16x128xf32, #tpu.memory_space<vmem>>, %arg1: memref<16x128xf32, #tpu.memory_space<vmem>>, %arg2: memref<2x3x16xf32, #tpu.memory_space<vmem>>, %arg3: memref<2x3x16xf32, #tpu.memory_space<vmem>>, %arg4: memref<1x128xf32, #tpu.memory_space<vmem>>, %arg5: memref<1x128xf32, #tpu.memory_space<vmem>>, %arg6: memref<16x128xf32, #tpu.memory_space<vmem>>, %arg7: memref<2x3x16xf32, #tpu.memory_space<vmem>>, %arg8: memref<1x128xf32, #tpu.memory_space<vmem>>) attributes {dimension_semantics = [], scalar_prefetch = 0 : i64, scratch_operands = 0 : i64, tpu.core_type = #tpu.core_type<tc>} {
    %c0 = arith.constant 0 : index
    %c0_0 = arith.constant 0 : index
    %0 = vector.load %arg0[%c0, %c0_0] : memref<16x128xf32, #tpu.memory_space<vmem>>, vector<16x128xf32>
    %c0_1 = arith.constant 0 : index
    %c0_2 = arith.constant 0 : index
    %1 = vector.load %arg1[%c0_1, %c0_2] : memref<16x128xf32, #tpu.memory_space<vmem>>, vector<16x128xf32>
    %cst = arith.constant -1.500000e+00 : f32
    %2 = vector.broadcast %cst : f32 to vector<16x128xf32>
    %3 = arith.mulf %1, %2 : vector<16x128xf32>
    %4 = arith.addf %0, %3 : vector<16x128xf32>
    %c0_3 = arith.constant 0 : index
    %c0_4 = arith.constant 0 : index
    %5 = vector.load %arg6[%c0_3, %c0_4] : memref<16x128xf32, #tpu.memory_space<vmem>>, vector<16x128xf32>
    tpu.vector_store %arg6[%c0_3, %c0_4], %4 {strides = array<i32>} : memref<16x128xf32, #tpu.memory_space<vmem>>, vector<16x128xf32>,
    %c0_5 = arith.constant 0 : index
    %c0_6 = arith.constant 0 : index
    %c0_7 = arith.constant 0 : index
    %6 = vector.load %arg2[%c0_5, %c0_6, %c0_7] : memref<2x3x16xf32, #tpu.memory_space<vmem>>, vector<2x3x16xf32>
    %cst_8 = arith.constant 6.000000e-01 : f32
    %7 = vector.broadcast %cst_8 : f32 to vector<2x3x16xf32>
    %8 = arith.mulf %6, %7 : vector<2x3x16xf32>
    %c0_9 = arith.constant 0 : index
    %c0_10 = arith.constant 0 : index
    %c0_11 = arith.constant 0 : index
    %9 = vector.load %arg3[%c0_9, %c0_10, %c0_11] : memref<2x3x16xf32, #tpu.memory_space<vmem>>, vector<2x3x16xf32>
    %cst_12 = arith.constant 4.000000e-01 : f32
    %10 = vector.broadcast %cst_12 : f32 to vector<2x3x16xf32>
    %11 = arith.mulf %9, %10 : vector<2x3x16xf32>
    %12 = arith.addf %8, %11 : vector<2x3x16xf32>
    %c0_13 = arith.constant 0 : index
    %c0_14 = arith.constant 0 : index
    %c0_15 = arith.constant 0 : index
    %13 = vector.load %arg7[%c0_13, %c0_14, %c0_15] : memref<2x3x16xf32, #tpu.memory_space<vmem>>, vector<2x3x16xf32>
    tpu.vector_store %arg7[%c0_13, %c0_14, %c0_15], %12 {strides = array<i32>} : memref<2x3x16xf32, #tpu.memory_space<vmem>>, vector<2x3x16xf32>,
    %c0_16 = arith.constant 0 : index
    %c0_17 = arith.constant 0 : index
    %14 = vector.load %arg4[%c0_16, %c0_17] : memref<1x128xf32, #tpu.memory_space<vmem>>, vector<1x128xf32>
    %cst_18 = arith.constant 3.000000e+00 : f32
    %15 = vector.broadcast %cst_18 : f32 to vector<1x128xf32>
    %16 = arith.mulf %14, %15 : vector<1x128xf32>
    %c0_19 = arith.constant 0 : index
    %c0_20 = arith.constant 0 : index
    %17 = vector.load %arg5[%c0_19, %c0_20] : memref<1x128xf32, #tpu.memory_space<vmem>>, vector<1x128xf32>
    %18 = arith.addf %16, %17 : vector<1x128xf32>
    %c0_21 = arith.constant 0 : index
    %c0_22 = arith.constant 0 : index
    %19 = vector.load %arg8[%c0_21, %c0_22] : memref<1x128xf32, #tpu.memory_space<vmem>>, vector<1x128xf32>
    tpu.vector_store %arg8[%c0_21, %c0_22], %18 {strides = array<i32>} : memref<1x128xf32, #tpu.memory_space<vmem>>, vector<1x128xf32>,
    return
  }
}

</mosaic_0001>

<bundles_post_ra>
// kernel: model_forward.1
= control target key start
LH: loop header
LB: loop body
LE: loop exit
PB: predicated region body
PF: predicated region fallthrough
CT: control target
= control target key end

     0   :  { %vm46_vm0 = vcmask 124928   ;;  %s158_s0 = inlined_call_operand.vmem [shape: f32[16,128], index: 0, kind: input, shape index: {}]   ;;  %s159_s1 = inlined_call_operand.vmem [shape: f32[16,128], index: 1, kind: input, shape index: {}]   ;;  %s160_s2 = inlined_call_operand.vmem [shape: f32[2,3,16], index: 2, kind: input, shape index: {}]   ;;  %s161_s3 = inlined_call_operand.vmem [shape: f32[2,3,16], index: 3, kind: input, shape index: {}]   ;;  %s162_s4 = inlined_call_operand.vmem [shape: f32[1,128], index: 4, kind: input, shape index: {}]   ;;  %s163_s5 = inlined_call_operand.vmem [shape: f32[1,128], index: 5, kind: input, shape index: {}]   ;;  %s164_s6 = inlined_call_operand.vmem [shape: f32[16,128], index: 6, kind: output, shape index: {0}]   ;;  %s165_s7 = inlined_call_operand.vmem [shape: f32[2,3,16], index: 7, kind: output, shape index: {1}]   ;;  %s166_s8 = inlined_call_operand.vmem [shape: f32[1,128], index: 8, kind: output, shape index: {2}]  }
   0x1   :  { %v26_v0 = vld [vmem:[%s158_s0] sm:$0xff]  ;;  %v27_v2 = vld [vmem:[%s158_s0 + $0x8] sm:$0xff] }
   0x2   :  { %v28_v1 = vld [vmem:[%s159_s1] sm:$0xff]  ;;  %v29_v4 = vld [vmem:[%s159_s1 + $0x8] sm:$0xff] }
   0x3   :  { %v30_v3 = vmul.f32 -1.5, %v28_v1  ;;  %v36_v5 = vld [vmem:[%s160_s2] sm:$0x7]  ;;  %v31_v7 = vmul.f32 -1.5, %v29_v4  ;;  %v37_v11 = vld [vmem:[%s160_s2 + $0x4] sm:$0x7] }
   0x4   :  { %v40_v6 = vld [vmem:[%s161_s3] sm:$0x7]  ;;  %v38_v8 = vmul.f32 0.6, %v36_v5  ;;  %v41_v12 = vld [vmem:[%s161_s3 + $0x4] sm:$0x7] }
   0x5   :  { %v42_v9 = vmul.f32 0.4, %v40_v6  ;;  %v32_v10 = vadd.f32 %v30_v3, %v26_v0  ;;  %v49_v13 = vld [vmem:[%s162_s4] sm:$0x1]  ;;  %v33_v14 = vadd.f32 %v31_v7, %v27_v2  ;;  %v39_v16 = vmul.f32 0.6, %v37_v11 }
   0x6   :  { %v43_v17 = vmul.f32 0.4, %v41_v12  ;;  %v51_v18 = vld [vmem:[%s163_s5] sm:$0x1]  ;;  %v50_v19 = vmul.f32 3.0, %v49_v13 }
   0x7   :  { %v44_v15 = vadd.f32 %v42_v9, %v38_v8  ;;  %34 = vst [vmem:[%s164_s6] sm:$0xff] %v32_v10  ;;  %35 = vst [vmem:[%s164_s6 + $0x8] sm:$0xff] %v33_v14 }
   0x8   :  { %v45_v20 = vadd.f32 %v43_v17, %v39_v16  ;;  %v52_v21 = vadd.f32 %v51_v18, %v50_v19 }
   0x9   :  { %47 = vst.msk [vmem:[%s165_s7] sm:$0x7] %vm46_vm0, %v44_v15 }
   0xa   :  { %48 = vst.msk [vmem:[%s165_s7 + $0x4] sm:$0x7] %vm46_vm0, %v45_v20  ;;  %53 = vst [vmem:[%s166_s8] sm:$0x1] %v52_v21 }

</bundles_post_ra>
